<compile_context>
chip_gen: v5e
topology: v5e:2x2
jax: 0.10.0
libtpu: 0.0.40
codegen_flags: <defaults>
</compile_context>

<pallas_src>
import functools

import jax
import jax.numpy as jnp
from jax import lax
from jax.experimental import pallas as pl
from jax.experimental.pallas import tpu as pltpu


def _coral_kernel(src_ref, tgt_ref, out_ref, gram_acc, s_sum, t_sum, *,
                  n_rows, tk, needs_mask):
    """One batch-tile step of the CORAL reduction.

    src_ref, tgt_ref : (TK, D) VMEM tiles (native dtype).
    out_ref          : (1, 1) f32 scalar in SMEM (written on the last step).
    gram_acc         : (D, D) f32 VMEM accumulator of (src^T src - tgt^T tgt).
    s_sum, t_sum     : (1, D) f32 VMEM accumulators of the row sums.
    """
    step = pl.program_id(0)
    nsteps = pl.num_programs(0)

    @pl.when(step == 0)
    def _init():
        gram_acc[...] = jnp.zeros_like(gram_acc)
        s_sum[...] = jnp.zeros_like(s_sum)
        t_sum[...] = jnp.zeros_like(t_sum)

    # Contract over rows: x^T x on the MXU with f32 accumulation.
    dn = (((0,), (0,)), ((), ()))

    def accumulate(s, t):
        gram_acc[...] += lax.dot_general(s, s, dn,
                                         preferred_element_type=jnp.float32)
        gram_acc[...] -= lax.dot_general(t, t, dn,
                                         preferred_element_type=jnp.float32)
        s_sum[...] += jnp.sum(s.astype(jnp.float32), axis=0, keepdims=True)
        t_sum[...] += jnp.sum(t.astype(jnp.float32), axis=0, keepdims=True)

    if needs_mask:
        # Only the last (padded) tile needs masking; keep all other steps
        # select-free so the VALU stays off the MXU/DMA critical path.
        is_last = step == nsteps - 1

        @pl.when(jnp.logical_not(is_last))
        def _full_tile():
            accumulate(src_ref[...], tgt_ref[...])

        @pl.when(is_last)
        def _masked_tile():
            row = lax.broadcasted_iota(jnp.int32, (tk, 1), 0) + step * tk
            valid = row < n_rows
            s = src_ref[...]
            t = tgt_ref[...]
            accumulate(jnp.where(valid, s, jnp.zeros_like(s)),
                       jnp.where(valid, t, jnp.zeros_like(t)))
    else:
        accumulate(src_ref[...], tgt_ref[...])

    @pl.when(step == nsteps - 1)
    def _finalize():
        # Mean correction: (s_sum^T s_sum - t_sum^T t_sum) / n.
        ss = s_sum[...]
        ts = t_sum[...]
        corr = (
            lax.dot_general(ss, ss, dn, preferred_element_type=jnp.float32)
            - lax.dot_general(ts, ts, dn, preferred_element_type=jnp.float32)
        ) * (1.0 / n_rows)
        diff = gram_acc[...] - corr
        inv_nm1 = 1.0 / (n_rows - 1)
        # ||cov_s - cov_t||_F^2 with the 1/(n-1) scale folded in once.
        # TODO(synk): for very large D, compute this norm block-wise over
        # gram_acc to avoid materializing a second full DxD transient.
        out_ref[0, 0] = jnp.sum(diff * diff) * (inv_nm1 * inv_nm1)


def _min_sublane(dtype):
    # Minimum sublane tile per dtype: f32 -> 8, bf16 -> 16, int8/fp8 -> 32.
    return {4: 8, 2: 16, 1: 32}.get(jnp.dtype(dtype).itemsize, 8)


def _choose_tk(n, d, dtype):
    """Batch-tile rows: target ~16 MiB of double-buffered input slabs."""
    itemsize = jnp.dtype(dtype).itemsize
    slab_budget = 16 << 20            # 2 inputs x 2 buffers of (tk, d) slabs
    per_row = 2 * 2 * d * itemsize
    tk = max(256, min(2048, (slab_budget // per_row) // 256 * 256))
    return n if n <= tk else tk


def coral_loss(source_features, target_features, *, tk=None):
    """CORAL loss between two (batch, feature_dim) arrays. Returns scalar f32."""
    assert source_features.shape == target_features.shape
    assert source_features.ndim == 2
    assert source_features.dtype == target_features.dtype
    n, d = source_features.shape
    # TODO(synk): n == 1 gives inf in the PyTorch module (1/(n-1)); require n>=2.
    assert n >= 2, "CORAL loss requires batch size >= 2"

    dtype = source_features.dtype
    itemsize = jnp.dtype(dtype).itemsize
    sublane = _min_sublane(dtype)

    if tk is None:
        tk = _choose_tk(n, d, dtype)
    tk = min(int(tk), n)
    if tk < n:
        assert tk % sublane == 0, (
            f"batch tile ({tk}) must be a multiple of the {dtype} sublane "
            f"tile ({sublane}) when the batch does not fit in a single tile")

    nsteps = pl.cdiv(n, tk)
    needs_mask = (n % tk) != 0

    # 3-deep input pipelining when per-step compute is short (small D, many
    # grid steps) so DMA issue latency between steps stays hidden.
    deep_pipeline = (d <= 512) and (nsteps >= 8) and hasattr(pl, "Buffered")
    n_in_buffers = 3 if deep_pipeline else 2

    def make_in_spec():
        idx = lambda i: (i, 0)
        if deep_pipeline:
            try:
                return pl.BlockSpec((tk, d), idx, pipeline_mode=pl.Buffered(3))
            except TypeError:   # older jax without pipeline_mode support
                pass
        return pl.BlockSpec((tk, d), idx)

    # VMEM plan from the actual tile footprint (no fudge factor): Gram
    # accumulator + finalize transients + buffered input slabs + row sums,
    # capped at this generation's VMEM capacity minus compiler margin.
    vmem_bytes = (
        d * d * 4                                   # gram_acc
        + 3 * d * d * 4                             # finalize transients
        + n_in_buffers * 2 * tk * d * itemsize      # buffered input slabs
        + 2 * d * 4                                 # row-sum accumulators
        + (2 << 20)                                 # headroom
    )
    try:
        vmem_cap = int(getattr(pltpu.get_tpu_info(), "vmem_capacity_bytes",
                               64 << 20))
    except Exception:
        vmem_cap = 64 << 20
    vmem_limit = int(min(vmem_cap - (8 << 20), max(32 << 20, vmem_bytes)))

    kernel = functools.partial(
        _coral_kernel, n_rows=int(n), tk=int(tk), needs_mask=bool(needs_mask))

    out = pl.pallas_call(
        kernel,
        out_shape=jax.ShapeDtypeStruct((1, 1), jnp.float32),
        grid_spec=pltpu.PrefetchScalarGridSpec(
            num_scalar_prefetch=0,
            grid=(nsteps,),
            in_specs=[make_in_spec(), make_in_spec()],
            out_specs=pl.BlockSpec(
                (1, 1), lambda i: (0, 0), memory_space=pltpu.MemorySpace.SMEM
            ),
            scratch_shapes=[
                pltpu.VMEM((d, d), jnp.float32),   # gram-difference accumulator
                pltpu.VMEM((1, d), jnp.float32),   # src row-sum
                pltpu.VMEM((1, d), jnp.float32),   # tgt row-sum
            ],
        ),
        compiler_params=pltpu.CompilerParams(
            dimension_semantics=("arbitrary",),    # batch axis is a reduction
            vmem_limit_bytes=vmem_limit,
        ),
    )(source_features, target_features)
    # TODO(synk): on v7x add a leading "parallel" grid axis over Gram column
    # blocks ((D, D/nblk) accumulator per block) to use both TensorCores and
    # halve the per-TC accumulator footprint under the 64 MiB VMEM ceiling.
    return out[0, 0]


def _coral_loss_ref(src, tgt):
    # Pure-JAX reference identical to the PyTorch module semantics.
    def cov(x):
        n = x.shape[0]
        x = x.astype(jnp.float32)
        xc = x - jnp.mean(x, axis=0, keepdims=True)
        return (xc.T @ xc) / (n - 1)

    dlt = cov(src) - cov(tgt)
    return jnp.sum(dlt * dlt)


if __name__ == "__main__":
    key = jax.random.PRNGKey(0)
    k1, k2, k3, k4, k5, k6 = jax.random.split(key, 6)

    # Test 1: small shape, single-step grid (block == full array, no mask).
    src = jax.random.normal(k1, (8, 128), dtype=jnp.float32)
    tgt = jax.random.normal(k2, (8, 128), dtype=jnp.float32) * 1.3 + 0.2
    loss = coral_loss(src, tgt)
    jax.block_until_ready(loss)
    ref = _coral_loss_ref(src, tgt)
    assert jnp.allclose(loss, ref, rtol=1e-4, atol=1e-4), (loss, ref)

    # Test 2: multi-tile grid with a masked (padded) last batch tile.
    src2 = jax.random.normal(k3, (20, 128), dtype=jnp.float32) * 0.7 - 0.1
    tgt2 = jax.random.normal(k4, (20, 128), dtype=jnp.float32) * 1.1 + 0.3
    loss2 = coral_loss(src2, tgt2, tk=8)
    jax.block_until_ready(loss2)
    ref2 = _coral_loss_ref(src2, tgt2)
    assert jnp.allclose(loss2, ref2, rtol=1e-4, atol=1e-4), (loss2, ref2)

    # Test 3: many unmasked steps -> exercises the select-free accumulate
    # path and the 3-deep input pipeline (small D, 8 grid steps).
    src3 = jax.random.normal(k5, (2048, 128), dtype=jnp.float32) * 0.5
    tgt3 = jax.random.normal(k6, (2048, 128), dtype=jnp.float32) * 0.8 + 0.1
    loss3 = coral_loss(src3, tgt3, tk=256)
    jax.block_until_ready(loss3)
    ref3 = _coral_loss_ref(src3, tgt3)
    assert jnp.allclose(loss3, ref3, rtol=1e-3, atol=1e-3), (loss3, ref3)

    print("KERNEL_OK")
</pallas_src>

<mosaic_0001>
module attributes {stable_mosaic.version = 11 : i64} {
  func.func @_coral_kernel(%arg0: i32, %arg1: memref<8x128xf32, #tpu.memory_space<vmem>>, %arg2: memref<8x128xf32, #tpu.memory_space<vmem>>, %arg3: memref<1x1xf32, #tpu.memory_space<smem>>, %arg4: memref<128x128xf32, #tpu.memory_space<vmem>>, %arg5: memref<1x128xf32, #tpu.memory_space<vmem>>, %arg6: memref<1x128xf32, #tpu.memory_space<vmem>>) attributes {dimension_semantics = [#tpu.dimension_semantics<arbitrary>], iteration_bounds = array<i64: 1>, scalar_prefetch = 0 : i64, scratch_operands = 3 : i64, tpu.core_type = #tpu.core_type<tc>, window_params = [{transform_indices = @transform_0, window_bounds = array<i64: 8, 128>}, {transform_indices = @transform_1, window_bounds = array<i64: 8, 128>}, {transform_indices = @transform_2, window_bounds = array<i64: 1, 1>}]} {
    %c0_i32 = arith.constant 0 : i32
    %0 = arith.cmpi eq, %arg0, %c0_i32 : i32
    %1 = arith.extui %0 : i1 to i32
    %c0_i32_0 = arith.constant 0 : i32
    %2 = arith.cmpi ne, %1, %c0_i32_0 : i32
    scf.if %2 {
      %cst_25 = arith.constant 0.000000e+00 : f32
      %26 = vector.broadcast %cst_25 : f32 to vector<128x128xf32>
      %c0_26 = arith.constant 0 : index
      %c0_27 = arith.constant 0 : index
      %27 = vector.load %arg4[%c0_26, %c0_27] : memref<128x128xf32, #tpu.memory_space<vmem>>, vector<128x128xf32>
      tpu.vector_store %arg4[%c0_26, %c0_27], %26 {strides = array<i32>} : memref<128x128xf32, #tpu.memory_space<vmem>>, vector<128x128xf32>,
      %cst_28 = arith.constant 0.000000e+00 : f32
      %28 = vector.broadcast %cst_28 : f32 to vector<1x128xf32>
      %c0_29 = arith.constant 0 : index
      %c0_30 = arith.constant 0 : index
      %29 = vector.load %arg5[%c0_29, %c0_30] : memref<1x128xf32, #tpu.memory_space<vmem>>, vector<1x128xf32>
      tpu.vector_store %arg5[%c0_29, %c0_30], %28 {strides = array<i32>} : memref<1x128xf32, #tpu.memory_space<vmem>>, vector<1x128xf32>,
      %cst_31 = arith.constant 0.000000e+00 : f32
      %30 = vector.broadcast %cst_31 : f32 to vector<1x128xf32>
      %c0_32 = arith.constant 0 : index
      %c0_33 = arith.constant 0 : index
      %31 = vector.load %arg6[%c0_32, %c0_33] : memref<1x128xf32, #tpu.memory_space<vmem>>, vector<1x128xf32>
      tpu.vector_store %arg6[%c0_32, %c0_33], %30 {strides = array<i32>} : memref<1x128xf32, #tpu.memory_space<vmem>>, vector<1x128xf32>,
    } else {
    }
    %c0 = arith.constant 0 : index
    %c0_1 = arith.constant 0 : index
    %3 = vector.load %arg1[%c0, %c0_1] : memref<8x128xf32, #tpu.memory_space<vmem>>, vector<8x128xf32>
    %c0_2 = arith.constant 0 : index
    %c0_3 = arith.constant 0 : index
    %4 = vector.load %arg2[%c0_2, %c0_3] : memref<8x128xf32, #tpu.memory_space<vmem>>, vector<8x128xf32>
    %c0_4 = arith.constant 0 : index
    %c0_5 = arith.constant 0 : index
    %5 = vector.load %arg4[%c0_4, %c0_5] : memref<128x128xf32, #tpu.memory_space<vmem>>, vector<128x128xf32>
    %cst = arith.constant dense<0.000000e+00> : vector<128x128xf32>
    %6 = tpu.matmul %3, %3, %cst {dimension_numbers = #tpu.dot_dimension_numbers<[0], [0], [1], [1], [0, 1, 1, 1], [], []>} : vector<8x128xf32>, vector<8x128xf32>, vector<128x128xf32> -> vector<128x128xf32>
    %7 = arith.addf %5, %6 : vector<128x128xf32>
    %c0_6 = arith.constant 0 : index
    %c0_7 = arith.constant 0 : index
    %8 = vector.load %arg4[%c0_6, %c0_7] : memref<128x128xf32, #tpu.memory_space<vmem>>, vector<128x128xf32>
    tpu.vector_store %arg4[%c0_6, %c0_7], %7 {strides = array<i32>} : memref<128x128xf32, #tpu.memory_space<vmem>>, vector<128x128xf32>,
    %c0_8 = arith.constant 0 : index
    %c0_9 = arith.constant 0 : index
    %9 = vector.load %arg4[%c0_8, %c0_9] : memref<128x128xf32, #tpu.memory_space<vmem>>, vector<128x128xf32>
    %cst_10 = arith.constant dense<0.000000e+00> : vector<128x128xf32>
    %10 = tpu.matmul %4, %4, %cst_10 {dimension_numbers = #tpu.dot_dimension_numbers<[0], [0], [1], [1], [0, 1, 1, 1], [], []>} : vector<8x128xf32>, vector<8x128xf32>, vector<128x128xf32> -> vector<128x128xf32>
    %11 = arith.subf %9, %10 : vector<128x128xf32>
    %c0_11 = arith.constant 0 : index
    %c0_12 = arith.constant 0 : index
    %12 = vector.load %arg4[%c0_11, %c0_12] : memref<128x128xf32, #tpu.memory_space<vmem>>, vector<128x128xf32>
    tpu.vector_store %arg4[%c0_11, %c0_12], %11 {strides = array<i32>} : memref<128x128xf32, #tpu.memory_space<vmem>>, vector<128x128xf32>,
    %c0_13 = arith.constant 0 : index
    %c0_14 = arith.constant 0 : index
    %13 = vector.load %arg5[%c0_13, %c0_14] : memref<1x128xf32, #tpu.memory_space<vmem>>, vector<1x128xf32>
    %cst_15 = arith.constant dense<0.000000e+00> : vector<128xf32>
    %14 = vector.multi_reduction <add>, %3, %cst_15 [0] : vector<8x128xf32> to vector<128xf32>
    %15 = vector.shape_cast %14 : vector<128xf32> to vector<1x128xf32>
    %16 = arith.addf %13, %15 : vector<1x128xf32>
    %c0_16 = arith.constant 0 : index
    %c0_17 = arith.constant 0 : index
    %17 = vector.load %arg5[%c0_16, %c0_17] : memref<1x128xf32, #tpu.memory_space<vmem>>, vector<1x128xf32>
    tpu.vector_store %arg5[%c0_16, %c0_17], %16 {strides = array<i32>} : memref<1x128xf32, #tpu.memory_space<vmem>>, vector<1x128xf32>,
    %c0_18 = arith.constant 0 : index
    %c0_19 = arith.constant 0 : index
    %18 = vector.load %arg6[%c0_18, %c0_19] : memref<1x128xf32, #tpu.memory_space<vmem>>, vector<1x128xf32>
    %cst_20 = arith.constant dense<0.000000e+00> : vector<128xf32>
    %19 = vector.multi_reduction <add>, %4, %cst_20 [0] : vector<8x128xf32> to vector<128xf32>
    %20 = vector.shape_cast %19 : vector<128xf32> to vector<1x128xf32>
    %21 = arith.addf %18, %20 : vector<1x128xf32>
    %c0_21 = arith.constant 0 : index
    %c0_22 = arith.constant 0 : index
    %22 = vector.load %arg6[%c0_21, %c0_22] : memref<1x128xf32, #tpu.memory_space<vmem>>, vector<1x128xf32>
    tpu.vector_store %arg6[%c0_21, %c0_22], %21 {strides = array<i32>} : memref<1x128xf32, #tpu.memory_space<vmem>>, vector<1x128xf32>,
    %c0_i32_23 = arith.constant 0 : i32
    %23 = arith.cmpi eq, %arg0, %c0_i32_23 : i32
    %24 = arith.extui %23 : i1 to i32
    %c0_i32_24 = arith.constant 0 : i32
    %25 = arith.cmpi ne, %24, %c0_i32_24 : i32
    scf.if %25 {
      %c0_25 = arith.constant 0 : index
      %c0_26 = arith.constant 0 : index
      %26 = vector.load %arg5[%c0_25, %c0_26] : memref<1x128xf32, #tpu.memory_space<vmem>>, vector<1x128xf32>
      %c0_27 = arith.constant 0 : index
      %c0_28 = arith.constant 0 : index
      %27 = vector.load %arg6[%c0_27, %c0_28] : memref<1x128xf32, #tpu.memory_space<vmem>>, vector<1x128xf32>
      %cst_29 = arith.constant dense<0.000000e+00> : vector<128x128xf32>
      %28 = tpu.matmul %26, %26, %cst_29 {dimension_numbers = #tpu.dot_dimension_numbers<[0], [0], [1], [1], [0, 1, 1, 1], [], []>} : vector<1x128xf32>, vector<1x128xf32>, vector<128x128xf32> -> vector<128x128xf32>
      %cst_30 = arith.constant dense<0.000000e+00> : vector<128x128xf32>
      %29 = tpu.matmul %27, %27, %cst_30 {dimension_numbers = #tpu.dot_dimension_numbers<[0], [0], [1], [1], [0, 1, 1, 1], [], []>} : vector<1x128xf32>, vector<1x128xf32>, vector<128x128xf32> -> vector<128x128xf32>
      %30 = arith.subf %28, %29 : vector<128x128xf32>
      %cst_31 = arith.constant 1.250000e-01 : f32
      %31 = vector.broadcast %cst_31 : f32 to vector<128x128xf32>
      %32 = arith.mulf %30, %31 : vector<128x128xf32>
      %c0_32 = arith.constant 0 : index
      %c0_33 = arith.constant 0 : index
      %33 = vector.load %arg4[%c0_32, %c0_33] : memref<128x128xf32, #tpu.memory_space<vmem>>, vector<128x128xf32>
      %34 = arith.subf %33, %32 : vector<128x128xf32>
      %35 = arith.mulf %34, %34 : vector<128x128xf32>
      %36 = vector.shape_cast %35 : vector<128x128xf32> to vector<1x128x128xf32>
      %cst_34 = arith.constant dense<0.000000e+00> : vector<1xf32>
      %37 = vector.multi_reduction <add>, %36, %cst_34 [1, 2] : vector<1x128x128xf32> to vector<1xf32>
      %38 = vector.shape_cast %37 : vector<1xf32> to vector<1x1x1xf32>
      %39 = vector.extract %38[0, 0, 0] : f32 from vector<1x1x1xf32>
      %cst_35 = arith.constant 0.0204081628 : f32
      %40 = arith.mulf %39, %cst_35 : f32
      %c0_36 = arith.constant 0 : index
      %c0_37 = arith.constant 0 : index
      %41 = memref.load %arg3[%c0_36, %c0_37] : memref<1x1xf32, #tpu.memory_space<smem>>
      memref.store %40, %arg3[%c0_36, %c0_37] : memref<1x1xf32, #tpu.memory_space<smem>>
    } else {
    }
    return
  }
  func.func @transform_0(%arg0: i32) -> (i32, i32) {
    %c0_i32 = arith.constant 0 : i32
    %c0_i32_0 = arith.constant 0 : i32
    return %arg0, %c0_i32 : i32, i32
  }
  func.func @transform_1(%arg0: i32) -> (i32, i32) {
    %c0_i32 = arith.constant 0 : i32
    %c0_i32_0 = arith.constant 0 : i32
    return %arg0, %c0_i32 : i32, i32
  }
  func.func @transform_2(%arg0: i32) -> (i32, i32) {
    %c0_i32 = arith.constant 0 : i32
    %c0_i32_0 = arith.constant 0 : i32
    %c0_i32_1 = arith.constant 0 : i32
    return %c0_i32, %c0_i32_0 : i32, i32
  }
}

</mosaic_0001>

<bundles_post_ra>
// kernel: tpu_custom_call.1
= control target key start
LH: loop header
LB: loop body
LE: loop exit
PB: predicated region body
PF: predicated region fallthrough
CT: control target
= control target key end

     0   :  { %7 = vsyncpa [#allocation6], 0  ;;  %s1126_s0 = inlined_call_operand.hbm [shape: f32[8,128], index: 0, kind: input, shape index: {}]   ;;  %s1127_s1 = inlined_call_operand.hbm [shape: f32[8,128], index: 1, kind: input, shape index: {}]   ;;  %s1128_s2 = inlined_call_operand.hbm [shape: f32[1,1], index: 2, kind: output, shape index: {}]  }
   0x1   :  { %8 = vsyncpa [#allocation9], 0 }
   0x2   :  { %9 = vsyncpa [#allocation7], 0  ;;  %s15_s11 = sshll.u32 %s1126_s0, 4  ;;  %s1034_s12 = smov [#allocation5]   ;;  %s16_s11 = int_to_ptr.hbm [resolvable:$true] %s15_s11 }
   0x3   :  { %s17_s13 = sshll.u32 %s1034_s12, 4  ;;  %s26_s16 = sshll.u32 %s1127_s1, 4  ;;  %s18_s13 = int_to_ptr.vmem [resolvable:$true] %s17_s13  ;;  %s27_s16 = int_to_ptr.hbm [resolvable:$true] %s26_s16 }
   0x4   :  { %20 = dma.hbm_to_vmem [thread:$0]  %s16_s11, 128, %s18_s13, [#allocation6]  }
   0x5   :  { %s1035_s17 = smov [#allocation8]  }
   0x6   :  { %s28_s18 = sshll.u32 %s1035_s17, 4  ;;  %s29_s18 = int_to_ptr.vmem [resolvable:$true] %s28_s18 }
   0x7   :  { %31 = dma.hbm_to_vmem [thread:$0]  %s27_s16, 128, %s29_s18, [#allocation9]  }
   0x8   :  { %1028 = dma.done.wait [#allocation6], 128  }
   0x9   :  { %1029 = vsyncadd [#allocation6], 4294967168 }
   0xa   :  { %1030 = dma.done.wait [#allocation9], 128  }
   0xb   :  { %1031 = vsyncadd [#allocation9], 4294967168  ;;  %v1036_v0 = vmov 0.0   ;;  %v62_v1 = vld [vmem:[#allocation5] sm:$0xff]  ;;  %v63_v3 = vld [vmem:[#allocation8] sm:$0xff]  ;;  %vm555_vm0 = vcmask 1040384  }
   0xc   :  { %60 = vst [vmem:[#allocation3] sm:$0x1] %v1036_v0  ;;  %80 = vxpose.xlu1.b32.start.end [1/1] (short) %v62_v1, 128  ;;  %v452_v2 = vrot.slane %v62_v1, 4  ;;  %176 = vmatpush.msra.mxu0 %v62_v1  ;;  %v461_v12 = vrot.slane %v63_v3, 4  ;;  %vm112_vm1 = vcmask 64512   ;;  %vm506_vm2 = vcmask 7168  }
   0xd   :  { %61 = vst [vmem:[#allocation4] sm:$0x1] %v1036_v0  ;;  %369 = vmatpush.msra.mxu1 %v63_v3  ;;  %s884_s19 = sshll.u32 %s1128_s2, 4  ;;  %s1037_s22 = smov [#allocation10]   ;;  %s885_s19 = int_to_ptr.hbm [resolvable:$true] %s884_s19 }
   0xe   :  { %v453_v4 = vadd.f32 %v452_v2, %v62_v1  ;;  %v462_v13 = vadd.f32 %v461_v12, %v63_v3 }
  0x10   :  { %v454_v5 = vrot.slane %v453_v4, 2  ;;  %v463_v14 = vrot.slane %v462_v13, 2 }
  0x12   :  { %v455_v6 = vadd.f32 %v454_v5, %v453_v4  ;;  %v464_v15 = vadd.f32 %v463_v14, %v462_v13 }
  0x13   :  { %v451_v8 = vld [vmem:[#allocation3] sm:$0x1] }
  0x14   :  { %v456_v7 = vrot.slane %v455_v6, 1  ;;  %v465_v16 = vrot.slane %v464_v15, 1  ;;  %v460_v18 = vld [vmem:[#allocation4] sm:$0x1] }
  0x16   :  { %v457_v9 = vadd.f32 %v456_v7, %v455_v6  ;;  %v466_v17 = vadd.f32 %v465_v16, %v464_v15 }
  0x18   :  { %v458_v10 = vadd.f32 %v457_v9, %v451_v8  ;;  %v467_v19 = vadd.f32 %v466_v17, %v460_v18 }
  0x1a   :  { %459 = vst [vmem:[#allocation3] sm:$0x1] %v458_v10 }
  0x1b   :  { %468 = vst [vmem:[#allocation4] sm:$0x1] %v467_v19 }
  0x21   :  { %v472_v11 = vld [vmem:[#allocation3] sm:$0x1] }
  0x22   :  { %474 = vxpose.xlu0.b32.start.end [1/1] (short) %v472_v11, 128  ;;  %v473_v20 = vld [vmem:[#allocation4] sm:$0x1]  ;;  %928 = vmatpush.msk.msra.mxu2 %vm555_vm0, %v472_v11 }
  0x23   :  { %945 = vmatpush.msk.msra.mxu3 %vm555_vm0, %v473_v20 }
  0x8c   :  { %274 = vxpose.xlu1.b32.start.end [1/1] (short) %v63_v3, 128 }
  0xa2   :  { %624 = vxpose.xlu0.b32.start.end [1/1] (short) %v473_v20, 128 }
  0xb0   :  { %v96_v21 = vpop.trf.xlu1 }
  0xb1   :  { %896 = vmatmul.msk.f32.vlgmr.msra.gmra.mxu0 %vm112_vm1, %v96_v21 }
  0xb8   :  { %v97_v22 = vpop.trf.xlu1 }
  0xb9   :  { %897 = vmatmul.msk.f32.gmra.mxu0 %vm112_vm1, %v97_v22 }
  0xc0   :  { %v98_v23 = vpop.trf.xlu1 }
  0xc1   :  { %898 = vmatmul.msk.f32.gmra.mxu0 %vm112_vm1, %v98_v23 }
  0xc6   :  { %v490_v24 = vpop.trf.xlu0 }
  0xc7   :  { %929 = vmatmul.msk.f32.vlgmr.msra.gmra.mxu2 %vm506_vm2, %v490_v24 }
  0xc8   :  { %v99_v25 = vpop.trf.xlu1 }
  0xc9   :  { %899 = vmatmul.msk.f32.gmra.mxu0 %vm112_vm1, %v99_v25 }
  0xce   :  { %v491_v26 = vpop.trf.xlu0 }
  0xcf   :  { %930 = vmatmul.msk.f32.gmra.mxu2 %vm506_vm2, %v491_v26 }
  0xd0   :  { %v100_v27 = vpop.trf.xlu1 }
  0xd1   :  { %900 = vmatmul.msk.f32.gmra.mxu0 %vm112_vm1, %v100_v27 }
  0xd6   :  { %v492_v28 = vpop.trf.xlu0 }
  0xd7   :  { %931 = vmatmul.msk.f32.gmra.mxu2 %vm506_vm2, %v492_v28 }
  0xd8   :  { %v101_v29 = vpop.trf.xlu1 }
  0xd9   :  { %901 = vmatmul.msk.f32.gmra.mxu0 %vm112_vm1, %v101_v29 }
  0xde   :  { %v493_v30 = vpop.trf.xlu0 }
  0xdf   :  { %932 = vmatmul.msk.f32.gmra.mxu2 %vm506_vm2, %v493_v30 }
  0xe0   :  { %v102_v31 = vpop.trf.xlu1 }
  0xe1   :  { %902 = vmatmul.msk.f32.gmra.mxu0 %vm112_vm1, %v102_v31 }
  0xe6   :  { %v494_v32 = vpop.trf.xlu0 }
  0xe7   :  { %933 = vmatmul.msk.f32.gmra.mxu2 %vm506_vm2, %v494_v32 }
  0xe8   :  { %v103_v33 = vpop.trf.xlu1 }
  0xe9   :  { %903 = vmatmul.msk.f32.gmra.mxu0 %vm112_vm1, %v103_v33 }
  0xee   :  { %v495_v34 = vpop.trf.xlu0 }
  0xef   :  { %934 = vmatmul.msk.f32.gmra.mxu2 %vm506_vm2, %v495_v34 }
  0xf0   :  { %v104_v35 = vpop.trf.xlu1 }
  0xf1   :  { %904 = vmatmul.msk.f32.gmra.mxu0 %vm112_vm1, %v104_v35 }
  0xf6   :  { %v496_v36 = vpop.trf.xlu0 }
  0xf7   :  { %935 = vmatmul.msk.f32.gmra.mxu2 %vm506_vm2, %v496_v36 }
  0xf8   :  { %v105_v37 = vpop.trf.xlu1 }
  0xf9   :  { %905 = vmatmul.msk.f32.gmra.mxu0 %vm112_vm1, %v105_v37 }
  0xfe   :  { %v497_v38 = vpop.trf.xlu0 }
  0xff   :  { %936 = vmatmul.msk.f32.gmra.mxu2 %vm506_vm2, %v497_v38 }
 0x100   :  { %v106_v39 = vpop.trf.xlu1 }
 0x101   :  { %906 = vmatmul.msk.f32.gmra.mxu0 %vm112_vm1, %v106_v39 }
 0x106   :  { %v498_v40 = vpop.trf.xlu0 }
 0x107   :  { %937 = vmatmul.msk.f32.gmra.mxu2 %vm506_vm2, %v498_v40 }
 0x108   :  { %v107_v41 = vpop.trf.xlu1 }
 0x109   :  { %907 = vmatmul.msk.f32.gmra.mxu0 %vm112_vm1, %v107_v41 }
 0x10e   :  { %v499_v42 = vpop.trf.xlu0 }
 0x10f   :  { %938 = vmatmul.msk.f32.gmra.mxu2 %vm506_vm2, %v499_v42 }
 0x110   :  { %v108_v43 = vpop.trf.xlu1 }
 0x111   :  { %908 = vmatmul.msk.f32.gmra.mxu0 %vm112_vm1, %v108_v43 }
 0x116   :  { %v500_v44 = vpop.trf.xlu0 }
 0x117   :  { %939 = vmatmul.msk.f32.gmra.mxu2 %vm506_vm2, %v500_v44 }
 0x118   :  { %v109_v45 = vpop.trf.xlu1 }
 0x119   :  { %909 = vmatmul.msk.f32.gmra.mxu0 %vm112_vm1, %v109_v45 }
 0x11e   :  { %v501_v46 = vpop.trf.xlu0 }
 0x11f   :  { %940 = vmatmul.msk.f32.gmra.mxu2 %vm506_vm2, %v501_v46 }
 0x120   :  { %v110_v47 = vpop.trf.xlu1 }
 0x121   :  { %910 = vmatmul.msk.f32.gmra.mxu0 %vm112_vm1, %v110_v47 }
 0x126   :  { %v502_v48 = vpop.trf.xlu0 }
 0x127   :  { %941 = vmatmul.msk.f32.gmra.mxu2 %vm506_vm2, %v502_v48 }
 0x128   :  { %v111_v49 = vpop.trf.xlu1 }
 0x129   :  { %911 = vmatmul.msk.f32.gmra.mxu0 %vm112_vm1, %v111_v49 }
 0x12e   :  { %v503_v50 = vpop.trf.xlu0  ;;  %v178_v16 = vpop.f32.mrf.mxu0 }
 0x12f   :  { %942 = vmatmul.msk.f32.gmra.mxu2 %vm506_vm2, %v503_v50 }
 0x130   :  { %v290_v51 = vpop.trf.xlu1 }
 0x131   :  { %912 = vmatmul.msk.f32.vlgmr.msra.gmra.mxu1 %vm112_vm1, %v290_v51 }
 0x136   :  { %v504_v52 = vpop.trf.xlu0  ;;  %v181_v22 = vpop.f32.mrf.mxu0 }
 0x137   :  { %943 = vmatmul.msk.f32.gmra.mxu2 %vm506_vm2, %v504_v52 }
 0x138   :  { %v291_v53 = vpop.trf.xlu1 }
 0x139   :  { %913 = vmatmul.msk.f32.gmra.mxu1 %vm112_vm1, %v291_v53 }
 0x13e   :  { %v505_v54 = vpop.trf.xlu0  ;;  %v184_v26 = vpop.f32.mrf.mxu0 }
 0x13f   :  { %944 = vmatmul.msk.f32.gmra.mxu2 %vm506_vm2, %v505_v54 }
 0x140   :  { %v292_v55 = vpop.trf.xlu1 }
 0x141   :  { %914 = vmatmul.msk.f32.gmra.mxu1 %vm112_vm1, %v292_v55 }
 0x146   :  { %v640_v56 = vpop.trf.xlu0  ;;  %v187_v30 = vpop.f32.mrf.mxu0 }
 0x147   :  { %946 = vmatmul.msk.f32.vlgmr.msra.gmra.mxu3 %vm506_vm2, %v640_v56 }
 0x148   :  { %v293_v57 = vpop.trf.xlu1 }
 0x149   :  { %915 = vmatmul.msk.f32.gmra.mxu1 %vm112_vm1, %v293_v57 }
 0x14a   :  { %v576_v19 = vpop.f32.mrf.mxu2 }
 0x14e   :  { %v641_v58 = vpop.trf.xlu0  ;;  %v190_v37 = vpop.f32.mrf.mxu0 }
 0x14f   :  { %947 = vmatmul.msk.f32.gmra.mxu3 %vm506_vm2, %v641_v58 }
 0x150   :  { %v294_v59 = vpop.trf.xlu1 }
 0x151   :  { %916 = vmatmul.msk.f32.gmra.mxu1 %vm112_vm1, %v294_v59 }
 0x152   :  { %v579_v23 = vpop.f32.mrf.mxu2 }
 0x156   :  { %v642_v60 = vpop.trf.xlu0  ;;  %v193_v57 = vpop.f32.mrf.mxu0 }
 0x157   :  { %948 = vmatmul.msk.f32.gmra.mxu3 %vm506_vm2, %v642_v60 }
 0x158   :  { %v295_v61 = vpop.trf.xlu1 }
 0x159   :  { %917 = vmatmul.msk.f32.gmra.mxu1 %vm112_vm1, %v295_v61 }
 0x15a   :  { %v582_v29 = vpop.f32.mrf.mxu2 }
 0x15e   :  { %v643_v62 = vpop.trf.xlu0 }
 0x15f   :  { %949 = vmatmul.msk.f32.gmra.mxu3 %vm506_vm2, %v643_v62 }
 0x160   :  { %v296_v63 = vpop.trf.xlu1 }
 0x161   :  { %918 = vmatmul.msk.f32.gmra.mxu1 %vm112_vm1, %v296_v63 }
 0x162   :  { %v585_v32 = vpop.f32.mrf.mxu2 }
 0x166   :  { %v644_v0 = vpop.trf.xlu0 }
 0x167   :  { %950 = vmatmul.msk.f32.gmra.mxu3 %vm506_vm2, %v644_v0 }
 0x168   :  { %v297_v1 = vpop.trf.xlu1 }
 0x169   :  { %919 = vmatmul.msk.f32.gmra.mxu1 %vm112_vm1, %v297_v1 }
 0x16a   :  { %v588_v42 = vpop.f32.mrf.mxu2 }
 0x16e   :  { %v645_v2 = vpop.trf.xlu0 }
 0x16f   :  { %951 = vmatmul.msk.f32.gmra.mxu3 %vm506_vm2, %v645_v2 }
 0x170   :  { %v298_v3 = vpop.trf.xlu1 }
 0x171   :  { %920 = vmatmul.msk.f32.gmra.mxu1 %vm112_vm1, %v298_v3 }
 0x172   :  { %v591_v52 = vpop.f32.mrf.mxu2 }
 0x176   :  { %v646_v4 = vpop.trf.xlu0 }
 0x177   :  { %952 = vmatmul.msk.f32.gmra.mxu3 %vm506_vm2, %v646_v4  ;;  %v196_v4 = vpop.f32.mrf.mxu0 }
 0x178   :  { %v299_v5 = vpop.trf.xlu1 }
 0x179   :  { %921 = vmatmul.msk.f32.gmra.mxu1 %vm112_vm1, %v299_v5 }
 0x17a   :  { %v594_v0 = vpop.f32.mrf.mxu2 }
 0x17e   :  { %v647_v6 = vpop.trf.xlu0 }
 0x17f   :  { %953 = vmatmul.msk.f32.gmra.mxu3 %vm506_vm2, %v647_v6 }
 0x180   :  { %v300_v7 = vpop.trf.xlu1 }
 0x181   :  { %922 = vmatmul.msk.f32.gmra.mxu1 %vm112_vm1, %v300_v7 }
 0x186   :  { %v648_v8 = vpop.trf.xlu0 }
 0x187   :  { %954 = vmatmul.msk.f32.gmra.mxu3 %vm506_vm2, %v648_v8 }
 0x188   :  { %v301_v9 = vpop.trf.xlu1 }
 0x189   :  { %923 = vmatmul.msk.f32.gmra.mxu1 %vm112_vm1, %v301_v9 }
 0x18e   :  { %v649_v10 = vpop.trf.xlu0 }
 0x18f   :  { %955 = vmatmul.msk.f32.gmra.mxu3 %vm506_vm2, %v649_v10  ;;  %v597_v10 = vpop.f32.mrf.mxu2 }
 0x190   :  { %v302_v11 = vpop.trf.xlu1 }
 0x191   :  { %924 = vmatmul.msk.f32.gmra.mxu1 %vm112_vm1, %v302_v11 }
 0x196   :  { %v650_v12 = vpop.trf.xlu0 }
 0x197   :  { %956 = vmatmul.msk.f32.gmra.mxu3 %vm506_vm2, %v650_v12 }
 0x198   :  { %v303_v13 = vpop.trf.xlu1 }
 0x199   :  { %925 = vmatmul.msk.f32.gmra.mxu1 %vm112_vm1, %v303_v13 }
 0x19e   :  { %v651_v14 = vpop.trf.xlu0 }
 0x19f   :  { %957 = vmatmul.msk.f32.gmra.mxu3 %vm506_vm2, %v651_v14 }
 0x1a0   :  { %v304_v15 = vpop.trf.xlu1 }
 0x1a1   :  { %926 = vmatmul.msk.f32.gmra.mxu1 %vm112_vm1, %v304_v15  ;;  %v199_v15 = vpop.f32.mrf.mxu0 }
 0x1a6   :  { %v652_v17 = vpop.trf.xlu0 }
 0x1a7   :  { %958 = vmatmul.msk.f32.gmra.mxu3 %vm506_vm2, %v652_v17  ;;  %v600_v17 = vpop.f32.mrf.mxu2 }
 0x1a8   :  { %v305_v18 = vpop.trf.xlu1 }
 0x1a9   :  { %927 = vmatmul.msk.f32.gmra.mxu1 %vm112_vm1, %v305_v18 }
 0x1ae   :  { %v371_v20 = vpop.f32.mrf.mxu1  ;;  %v653_v21 = vpop.trf.xlu0 }
 0x1af   :  { %959 = vmatmul.msk.f32.gmra.mxu3 %vm506_vm2, %v653_v21  ;;  %v419_v35 = vsub.f32 %v178_v16, %v371_v20  ;;  %v603_v21 = vpop.f32.mrf.mxu2 }
 0x1b6   :  { %v374_v24 = vpop.f32.mrf.mxu1  ;;  %v654_v25 = vpop.trf.xlu0 }
 0x1b7   :  { %960 = vmatmul.msk.f32.gmra.mxu3 %vm506_vm2, %v654_v25  ;;  %v420_v44 = vsub.f32 %v181_v22, %v374_v24  ;;  %v606_v25 = vpop.f32.mrf.mxu2 }
 0x1be   :  { %v377_v27 = vpop.f32.mrf.mxu1  ;;  %v655_v28 = vpop.trf.xlu0 }
 0x1bf   :  { %961 = vmatmul.msk.f32.gmra.mxu3 %vm506_vm2, %v655_v28  ;;  %v421_v53 = vsub.f32 %v184_v26, %v377_v27 }
 0x1c6   :  { %v380_v31 = vpop.f32.mrf.mxu1 }
 0x1c7   :  { %v422_v62 = vsub.f32 %v187_v30, %v380_v31 }
 0x1ca   :  { %v724_v33 = vpop.f32.mrf.mxu3 }
 0x1cb   :  { %v772_v34 = vsub.f32 %v576_v19, %v724_v33  ;;  %v202_v19 = vpop.f32.mrf.mxu0 }
 0x1cd   :  { %v788_v36 = vmul.f32 0.125, %v772_v34 }
 0x1ce   :  { %v383_v38 = vpop.f32.mrf.mxu1 }
 0x1cf   :  { %v820_v39 = vsub.f32 %v419_v35, %v788_v36  ;;  %v423_v40 = vsub.f32 %v190_v37, %v383_v38 }
 0x1d1   :  { %v836_v47 = vmul.f32 %v820_v39, %v820_v39 }
 0x1d2   :  { %v727_v41 = vpop.f32.mrf.mxu3 }
 0x1d3   :  { %v773_v43 = vsub.f32 %v579_v23, %v727_v41  ;;  %v205_v23 = vpop.f32.mrf.mxu0 }
 0x1d5   :  { %v789_v45 = vmul.f32 0.125, %v773_v43 }
 0x1d6   :  { %v386_v55 = vpop.f32.mrf.mxu1 }
 0x1d7   :  { %v821_v46 = vsub.f32 %v420_v44, %v789_v45 }
 0x1d9   :  { %v837_v48 = vmul.f32 %v821_v46, %v821_v46 }
 0x1da   :  { %v730_v49 = vpop.f32.mrf.mxu3 }
 0x1db   :  { %v852_v50 = vadd.f32 %v837_v48, %v836_v47  ;;  %v774_v51 = vsub.f32 %v582_v29, %v730_v49  ;;  %v208_v27 = vpop.f32.mrf.mxu0  ;;  %v609_v29 = vpop.f32.mrf.mxu2 }
 0x1dd   :  { %v790_v54 = vmul.f32 0.125, %v774_v51 }
 0x1de   :  { %v389_v2 = vpop.f32.mrf.mxu1 }
 0x1df   :  { %v822_v56 = vsub.f32 %v421_v53, %v790_v54  ;;  %v425_v46 = vsub.f32 %v196_v4, %v389_v2 }
 0x1e1   :  { %v838_v58 = vmul.f32 %v822_v56, %v822_v56 }
 0x1e2   :  { %v733_v59 = vpop.f32.mrf.mxu3 }
 0x1e3   :  { %v853_v60 = vadd.f32 %v852_v50, %v838_v58  ;;  %v775_v61 = vsub.f32 %v585_v32, %v733_v59  ;;  %v211_v32 = vpop.f32.mrf.mxu0  ;;  %v612_v34 = vpop.f32.mrf.mxu2 }
 0x1e5   :  { %v791_v63 = vmul.f32 0.125, %v775_v61 }
 0x1e6   :  { %v392_v12 = vpop.f32.mrf.mxu1 }
 0x1e7   :  { %v823_v1 = vsub.f32 %v422_v62, %v791_v63  ;;  %v426_v53 = vsub.f32 %v199_v15, %v392_v12 }
 0x1e9   :  { %v839_v3 = vmul.f32 %v823_v1, %v823_v1 }
 0x1ea   :  { %v736_v5 = vpop.f32.mrf.mxu3 }
 0x1eb   :  { %v854_v6 = vadd.f32 %v853_v60, %v839_v3  ;;  %v776_v7 = vsub.f32 %v588_v42, %v736_v5  ;;  %v214_v36 = vpop.f32.mrf.mxu0  ;;  %v424_v42 = vsub.f32 %v193_v57, %v386_v55  ;;  %v615_v45 = vpop.f32.mrf.mxu2 }
 0x1ed   :  { %v792_v8 = vmul.f32 0.125, %v776_v7 }
 0x1ee   :  { %v395_v18 = vpop.f32.mrf.mxu1 }
 0x1ef   :  { %v824_v9 = vsub.f32 %v423_v40, %v792_v8  ;;  %v427_v59 = vsub.f32 %v202_v19, %v395_v18 }
 0x1f1   :  { %v840_v11 = vmul.f32 %v824_v9, %v824_v9 }
 0x1f2   :  { %v739_v13 = vpop.f32.mrf.mxu3 }
 0x1f3   :  { %v855_v14 = vadd.f32 %v854_v6, %v840_v11  ;;  %v777_v37 = vsub.f32 %v591_v52, %v739_v13  ;;  %v217_v51 = vpop.f32.mrf.mxu0  ;;  %v618_v5 = vpop.f32.mrf.mxu2 }
 0x1f5   :  { %v793_v39 = vmul.f32 0.125, %v777_v37 }
 0x1f6   :  { %v398_v22 = vpop.f32.mrf.mxu1 }
 0x1f7   :  { %v825_v47 = vsub.f32 %v424_v42, %v793_v39 }
 0x1f9   :  { %v841_v52 = vmul.f32 %v825_v47, %v825_v47 }
 0x1fa   :  { %v742_v16 = vpop.f32.mrf.mxu3 }
 0x1fb   :  { %v778_v38 = vsub.f32 %v594_v0, %v742_v16  ;;  %v428_v0 = vsub.f32 %v205_v23, %v398_v22  ;;  %v856_v3 = vadd.f32 %v855_v14, %v841_v52 }
 0x1fd   :  { %v794_v43 = vmul.f32 0.125, %v778_v38 }
 0x1fe   :  { %v401_v26 = vpop.f32.mrf.mxu1 }
 0x1ff   :  { %v826_v54 = vsub.f32 %v425_v46, %v794_v43  ;;  %v429_v6 = vsub.f32 %v208_v27, %v401_v26 }
 0x201   :  { %v842_v55 = vmul.f32 %v826_v54, %v826_v54 }
 0x202   :  { %v745_v20 = vpop.f32.mrf.mxu3 }
 0x203   :  { %v779_v40 = vsub.f32 %v597_v10, %v745_v20  ;;  %v857_v10 = vadd.f32 %v856_v3, %v842_v55 }
 0x205   :  { %v795_v48 = vmul.f32 0.125, %v779_v40 }
 0x206   :  { %v404_v30 = vpop.f32.mrf.mxu1 }
 0x207   :  { %v827_v60 = vsub.f32 %v426_v53, %v795_v48  ;;  %v430_v13 = vsub.f32 %v211_v32, %v404_v30  ;;  %v621_v30 = vpop.f32.mrf.mxu2 }
 0x209   :  { %v843_v4 = vmul.f32 %v827_v60, %v827_v60 }
 0x20a   :  { %v748_v24 = vpop.f32.mrf.mxu3 }
 0x20b   :  { %v780_v44 = vsub.f32 %v600_v17, %v748_v24  ;;  %v220_v17 = vpop.f32.mrf.mxu0  ;;  %v858_v18 = vadd.f32 %v857_v10, %v843_v4 }
 0x20d   :  { %v796_v56 = vmul.f32 0.125, %v780_v44 }
 0x20e   :  { %v407_v35 = vpop.f32.mrf.mxu1 }
 0x20f   :  { %v828_v57 = vsub.f32 %v427_v59, %v796_v56  ;;  %v431_v19 = vsub.f32 %v214_v36, %v407_v35 }
 0x211   :  { %v844_v11 = vmul.f32 %v828_v57, %v828_v57 }
 0x212   :  { %v751_v28 = vpop.f32.mrf.mxu3 }
 0x213   :  { %v781_v50 = vsub.f32 %v603_v21, %v751_v28  ;;  %v859_v24 = vadd.f32 %v858_v18, %v844_v11  ;;  %v223_v42 = vpop.f32.mrf.mxu0 }
 0x215   :  { %v797_v62 = vmul.f32 0.125, %v781_v50 }
 0x216   :  { %v410_v49 = vpop.f32.mrf.mxu1 }
 0x217   :  { %v829_v7 = vsub.f32 %v428_v0, %v797_v62 }
 0x219   :  { %v845_v21 = vmul.f32 %v829_v7, %v829_v7 }
 0x21a   :  { %v754_v31 = vpop.f32.mrf.mxu3 }
 0x21b   :  { %v782_v58 = vsub.f32 %v606_v25, %v754_v31  ;;  %v432_v25 = vsub.f32 %v217_v51, %v410_v49 }
 0x21d   :  { %v798_v1 = vmul.f32 0.125, %v782_v58 }
 0x21e   :  { %v413_v12 = vpop.f32.mrf.mxu1 }
 0x21f   :  { %v830_v15 = vsub.f32 %v429_v6, %v798_v1  ;;  %v433_v31 = vsub.f32 %v220_v17, %v413_v12 }
 0x221   :  { %v846_v26 = vmul.f32 %v830_v15, %v830_v15 }
 0x222   :  { %v757_v33 = vpop.f32.mrf.mxu3 }
 0x223   :  { %v783_v63 = vsub.f32 %v609_v29, %v757_v33  ;;  %v860_v29 = vadd.f32 %v859_v24, %v845_v21 }
 0x225   :  { %v799_v8 = vmul.f32 0.125, %v783_v63  ;;  %v861_v32 = vadd.f32 %v860_v29, %v846_v26 }
 0x226   :  { %v416_v39 = vpop.f32.mrf.mxu1 }
 0x227   :  { %v831_v22 = vsub.f32 %v430_v13, %v799_v8  ;;  %v434_v43 = vsub.f32 %v223_v42, %v416_v39 }
 0x229   :  { %v847_v33 = vmul.f32 %v831_v22, %v831_v22 }
 0x22a   :  { %v760_v41 = vpop.f32.mrf.mxu3 }
 0x22b   :  { %v784_v2 = vsub.f32 %v612_v34, %v760_v41  ;;  %v862_v36 = vadd.f32 %v861_v32, %v847_v33 }
 0x22d   :  { %v800_v16 = vmul.f32 0.125, %v784_v2 }
 0x22f   :  { %v832_v27 = vsub.f32 %v431_v19, %v800_v16 }
 0x231   :  { %v848_v37 = vmul.f32 %v832_v27, %v832_v27 }
 0x232   :  { %v763_v61 = vpop.f32.mrf.mxu3 }
 0x233   :  { %v785_v9 = vsub.f32 %v615_v45, %v763_v61  ;;  %v863_v44 = vadd.f32 %v862_v36, %v848_v37 }
 0x235   :  { %v801_v23 = vmul.f32 0.125, %v785_v9 }
 0x237   :  { %v833_v34 = vsub.f32 %v432_v25, %v801_v23 }
 0x239   :  { %v849_v40 = vmul.f32 %v833_v34, %v833_v34 }
 0x23a   :  { %v766_v20 = vpop.f32.mrf.mxu3 }
 0x23b   :  { %v786_v14 = vsub.f32 %v618_v5, %v766_v20  ;;  %v864_v48 = vadd.f32 %v863_v44, %v849_v40 }
 0x23d   :  { %v802_v28 = vmul.f32 0.125, %v786_v14 }
 0x23f   :  { %v834_v38 = vsub.f32 %v433_v31, %v802_v28 }
 0x241   :  { %v850_v45 = vmul.f32 %v834_v38, %v834_v38 }
 0x242   :  { %v769_v35 = vpop.f32.mrf.mxu3 }
 0x243   :  { %v787_v41 = vsub.f32 %v621_v30, %v769_v35  ;;  %v865_v50 = vadd.f32 %v864_v48, %v850_v45 }
 0x245   :  { %v803_v46 = vmul.f32 0.125, %v787_v41 }
 0x247   :  { %v835_v47 = vsub.f32 %v434_v43, %v803_v46 }
 0x249   :  { %v851_v49 = vmul.f32 %v835_v47, %v835_v47 }
 0x24b   :  { %v866_v51 = vadd.f32 %v865_v50, %v851_v49 }
 0x24d   :  { %867 = vadd.xlane.f32.xlu2 %v866_v51 }
 0x2c0   :  { %v868_v53 = vpop.xlane.xlu2 %867 }
 0x2c1   :  { %v869_v54 = vrot.slane %v868_v53, 4 }
 0x2c3   :  { %v870_v56 = vadd.f32 %v869_v54, %v868_v53 }
 0x2c5   :  { %v871_v58 = vrot.slane %v870_v56, 2 }
 0x2c7   :  { %v872_v59 = vadd.f32 %v871_v58, %v870_v56 }
 0x2c9   :  { %v873_v52 = vrot.slane %v872_v59, 1 }
 0x2cb   :  { %v874_v60 = vadd.f32 %v873_v52, %v872_v59 }
 0x2cd   :  { %962 = vpush %v874_v60 }
 0x2fe   :  { %s963_s20 = spop %962 }
 0x2ff   :  { %s876_s21 = smul.f32 0.020408163, %s963_s20 }
 0x301   :  { %878 = sst [smem:[#allocation10]] %s876_s21 }
 0x302   :  { %887 = dma.smem_to_hbm %s1037_s22, 16, %s885_s19, [#allocation7]  }
 0x303   :  { %1032 = dma.done.wait [#allocation7], 16  }
 0x304   :  { %1033 = vsyncadd [#allocation7], 4294967280 }
 0x305   :  { %892 = sfence }
 0x306   :  { %893 = vsyncpa [#allocation6], 1 }
 0x307   :  { %894 = vsyncpa [#allocation9], 1 }
 0x308   :  { %895 = vsyncpa [#allocation7], 1 }

</bundles_post_ra>
